<compile_context>
chip_gen: v5e
topology: v5e:2x2
jax: 0.10.0
libtpu: 0.0.40
codegen_flags: <defaults>
</compile_context>

<pallas_src>
import functools
import numpy as np

import jax
import jax.numpy as jnp
from jax.experimental import pallas as pl
from jax.experimental.pallas import tpu as pltpu

NUM_CLASSES = 8
STRIDES = (4, 8)
C_FEAT = 16
N_HEAD = ((NUM_CLASSES + 5 + 7) // 8) * 8     # 16 rows: 8 cls + 4 box + 1 ctr + pad
FOCAL_ALPHA = 0.25
REG_WEIGHT = 0.1         # ('Reg', 0.1, L1)
CLASS_WEIGHT = 1.0       # ('Focal', 1.0, Focal)
CENTERNESS_WEIGHT = 1.0  # ('Centerness', 1.0, CenternessLoss)
GT_FIELDS = 6            # x1, y1, x2, y2, label, weight (per gt box, SMEM table)

DEFAULT_TILE_M = 8192    # stem conv: points per grid step (lane axis)
DEFAULT_TILE_P = 8192    # head conv + loss kernel: points per grid step
NSPLIT = 2               # outer "parallel" split of the loss grid (v7x megacore)
VMEM_LIMIT = 32 * 1024 * 1024   # safe on v5e/v6e (128 MiB) and v7x (64 MiB)


def _round_up(x, m):
    return (x + m - 1) // m * m


def _divide_no_nan(x, y):
    mask = y == 0.0
    safe = jnp.where(mask, jnp.ones_like(y), y)
    return jnp.where(mask, jnp.zeros_like(x), x / safe)


# ----------------------------------------------------------------------------
# Kernel 1: channels-first 1x1 conv (pointwise) as an MXU matmul
#   out[N, m] = w[N, K] @ x[K, m] + b[N, 1]    (optionally fused ReLU)
# ----------------------------------------------------------------------------
def _conv1x1_kernel(x_ref, w_ref, b_ref, o_ref, *, relu):
    x = x_ref[...].astype(w_ref.dtype)                       # f32 -> bf16 in-kernel
    acc = jnp.dot(w_ref[...], x, preferred_element_type=jnp.float32)
    acc = acc + b_ref[...]
    if relu:
        acc = jnp.maximum(acc, 0.0)
    o_ref[...] = acc.astype(o_ref.dtype)


def stem_conv(images_r, w, b, *, out_dtype=jnp.bfloat16):
    """images_r: [B, Cin, M] f32 -> [B, Cf, M] (bias + ReLU fused)."""
    B, Cin, M = images_r.shape
    Cf = w.shape[0]
    tile_m = M if M <= DEFAULT_TILE_M else DEFAULT_TILE_M    # ragged last tile is fine
    return pl.pallas_call(
        functools.partial(_conv1x1_kernel, relu=True),
        out_shape=jax.ShapeDtypeStruct((B, Cf, M), out_dtype),
        grid=(B, pl.cdiv(M, tile_m)),
        in_specs=[
            pl.BlockSpec((None, Cin, tile_m), lambda bb, i: (bb, 0, i)),
            pl.BlockSpec((Cf, Cin), lambda bb, i: (0, 0)),
            pl.BlockSpec((Cf, 1), lambda bb, i: (0, 0)),
        ],
        out_specs=pl.BlockSpec((None, Cf, tile_m), lambda bb, i: (bb, 0, i)),
        compiler_params=pltpu.CompilerParams(
            dimension_semantics=("parallel", "parallel"),
            vmem_limit_bytes=VMEM_LIMIT),
    )(images_r, w, b)


def _head_kernel(lvl_ref, x_ref, w_ref, b_ref, o_ref):
    del lvl_ref   # only used by the index maps (per-tile weight selection)
    _conv1x1_kernel(x_ref, w_ref, b_ref, o_ref, relu=False)


def head_conv(pooled_cat, w_stack, b_stack, tile_lvl, tile_p, *, out_dtype=jnp.bfloat16):
    """All head levels in one launch.  pooled_cat: [B, Cf, P] bf16 (levels concatenated
    on the lane axis, each padded to a tile multiple); w_stack: [L, N_HEAD, Cf];
    tile_lvl[i] (scalar prefetch) picks the weights for tile i."""
    B, Cf, P = pooled_cat.shape
    N = w_stack.shape[1]
    n_tiles = P // tile_p
    gs = pltpu.PrefetchScalarGridSpec(
        num_scalar_prefetch=1,
        grid=(B, n_tiles),
        in_specs=[
            pl.BlockSpec((None, Cf, tile_p), lambda bb, i, lvl: (bb, 0, i)),
            pl.BlockSpec((None, N, Cf), lambda bb, i, lvl: (lvl[i], 0, 0)),
            pl.BlockSpec((None, N, 1), lambda bb, i, lvl: (lvl[i], 0, 0)),
        ],
        out_specs=pl.BlockSpec((None, N, tile_p), lambda bb, i, lvl: (bb, 0, i)),
    )
    return pl.pallas_call(
        _head_kernel,
        out_shape=jax.ShapeDtypeStruct((B, N, P), out_dtype),
        grid_spec=gs,
        compiler_params=pltpu.CompilerParams(
            dimension_semantics=("parallel", "parallel"),
            vmem_limit_bytes=VMEM_LIMIT),
    )(tile_lvl, pooled_cat, w_stack, b_stack)


# ----------------------------------------------------------------------------
# Kernel 2: fused assigner + FCOS losses, tiled over points, split across cores
# ----------------------------------------------------------------------------
def _fcos_loss_kernel(preds_ref, pts_ref, gt_ref, out_ref, acc_ref, *,
                      B, G, image_h, image_w):
    i = pl.program_id(1)

    @pl.when(i == 0)
    def _init():
        acc_ref[...] = jnp.zeros_like(acc_ref)

    T = pts_ref.shape[1]
    px = pts_ref[0:1, :]                                      # [1, T]
    py = pts_ref[1:2, :]
    inv_s = pts_ref[2:3, :]                                   # 1/stride (0 on pads)
    pvalid = pts_ref[3:4, :]                                  # 1.0 real / 0.0 pad

    C = NUM_CLASSES
    a = FOCAL_ALPHA
    cls_iota = jax.lax.broadcasted_iota(jnp.int32, (C, T), 0)

    for b in range(B):
        # ---- assigner: smallest-area valid gt box strictly containing the point
        best_area = jnp.full((1, T), 1e30, jnp.float32)
        best_x1 = jnp.zeros((1, T), jnp.float32)              # default box (0,0,W,H)
        best_y1 = jnp.zeros((1, T), jnp.float32)
        best_x2 = jnp.full((1, T), image_w, jnp.float32)
        best_y2 = jnp.full((1, T), image_h, jnp.float32)
        best_lab = jnp.zeros((1, T), jnp.float32)
        best_w = jnp.zeros((1, T), jnp.float32)
        for g in range(G):
            base = (b * G + g) * GT_FIELDS
            x1 = gt_ref[base + 0]
            y1 = gt_ref[base + 1]
            x2 = gt_ref[base + 2]
            y2 = gt_ref[base + 3]
            lab = gt_ref[base + 4]
            wgt = gt_ref[base + 5]
            valid = jnp.logical_and(lab > 0.5, wgt > 0.0)
            l = px - x1
            t = py - y1
            r = x2 - px
            btm = y2 - py
            inside = jnp.minimum(jnp.minimum(l, t), jnp.minimum(r, btm)) > 0.0
            cand = jnp.logical_and(inside, valid)
            area = (x2 - x1) * (y2 - y1)
            cand_area = jnp.where(cand, area, 1e30)
            take = cand_area < best_area                      # first minimal area wins
            best_area = jnp.where(take, cand_area, best_area)
            best_x1 = jnp.where(take, x1, best_x1)
            best_y1 = jnp.where(take, y1, best_y1)
            best_x2 = jnp.where(take, x2, best_x2)
            best_y2 = jnp.where(take, y2, best_y2)
            best_lab = jnp.where(take, lab, best_lab)
            best_w = jnp.where(take, wgt, best_w)
        matched = (best_area < 1e30).astype(jnp.float32) * pvalid
        tbw = best_w * pvalid                                 # target_boxes_weights
        # target_labels_weights == 1.0 for real points; pvalid masks lane padding.

        # ---- box_coder.encode(target_boxes, points) / strides  (l, t, r, b)
        enc_l = (px - best_x1) * inv_s
        enc_t = (py - best_y1) * inv_s
        enc_r = (best_x2 - px) * inv_s
        enc_b = (best_y2 - py) * inv_s

        # ---- reg loss: L1 on encoded boxes (sum over the 4 coordinates)
        box_p = preds_ref[b, C:C + 4, :].astype(jnp.float32)  # [4, T]
        l1 = (jnp.abs(box_p[0:1, :] - enc_l) + jnp.abs(box_p[1:2, :] - enc_t)
              + jnp.abs(box_p[2:3, :] - enc_r) + jnp.abs(box_p[3:4, :] - enc_b))
        acc_ref[b:b + 1, :] += l1 * tbw

        # ---- class loss: sigmoid focal (alpha=0.25, gamma=2)
        x = preds_ref[b, 0:C, :].astype(jnp.float32)          # [C, T]
        lbl_i = best_lab.astype(jnp.int32)
        z = (cls_iota == (lbl_i - 1)).astype(jnp.float32) * tbw
        e = jnp.exp(-jnp.abs(x))                              # shared sigmoid / BCE term
        one_p_e = 1.0 + e
        p = jnp.where(x >= 0.0, 1.0, e) * pl.reciprocal(one_p_e, approx=True)
        bce = jnp.maximum(x, 0.0) - x * z + jnp.log(one_p_e)
        one_minus_pt = p + z - 2.0 * (p * z)                  # = 1 - p_t
        alpha_t = (1.0 - a) + (2.0 * a - 1.0) * z
        focal = alpha_t * (one_minus_pt * one_minus_pt) * bce
        acc_ref[B + b:B + b + 1, :] += jnp.sum(focal, axis=0, keepdims=True) * pvalid

        # ---- centerness loss: BCE-with-logits against sqrt(min/max ratio)
        ctr_p = preds_ref[b, C + 4:C + 5, :].astype(jnp.float32)   # [1, T]
        lr_min = jnp.minimum(enc_l, enc_r)
        lr_max = jnp.maximum(enc_l, enc_r)
        tb_min = jnp.minimum(enc_t, enc_b)
        tb_max = jnp.maximum(enc_t, enc_b)
        num = jnp.maximum(lr_min * tb_min, 0.0)
        den = jnp.maximum(lr_max * tb_max, 1e-6)              # clamp: no NaN on pads
        t_ctr = jnp.sqrt(num * pl.reciprocal(den, approx=True))
        ec = jnp.exp(-jnp.abs(ctr_p))
        bce_c = jnp.maximum(ctr_p, 0.0) - ctr_p * t_ctr + jnp.log(1.0 + ec)
        acc_ref[2 * B + b:2 * B + b + 1, :] += bce_c * tbw

        # ---- num_matches numerator
        acc_ref[3 * B + b:3 * B + b + 1, :] += matched

    @pl.when(i == pl.num_programs(1) - 1)
    def _finalize():
        reg = jnp.sum(acc_ref[0:B, :], axis=-1, keepdims=True)        # [B, 1]
        cls = jnp.sum(acc_ref[B:2 * B, :], axis=-1, keepdims=True)
        ctr = jnp.sum(acc_ref[2 * B:3 * B, :], axis=-1, keepdims=True)
        nm = jnp.sum(acc_ref[3 * B:4 * B, :], axis=-1, keepdims=True)
        lane = jax.lax.broadcasted_iota(jnp.int32, out_ref.shape, 1)
        out_ref[...] = jnp.where(lane == 0, reg,
                       jnp.where(lane == 1, cls,
                       jnp.where(lane == 2, ctr,
                       jnp.where(lane == 3, nm, 0.0))))


def pallas_fcos_losses(preds, pts, gt_flat, *, B, G, image_h, image_w,
                       tile_p, nsplit):
    """preds: [B, 16, P_pad] bf16, pts: [4, P_pad] f32, gt_flat: [B*G*6] f32 (SMEM)."""
    _, nh, p_pad = preds.shape
    n_tiles = p_pad // tile_p
    tps = n_tiles // nsplit

    kernel = functools.partial(_fcos_loss_kernel, B=B, G=G,
                               image_h=image_h, image_w=image_w)
    partials = pl.pallas_call(
        kernel,
        out_shape=jax.ShapeDtypeStruct((nsplit, B, 128), jnp.float32),
        grid=(nsplit, tps),
        in_specs=[
            pl.BlockSpec((B, nh, tile_p), lambda c, i: (0, 0, c * tps + i)),
            pl.BlockSpec((4, tile_p), lambda c, i: (0, c * tps + i)),
            pl.BlockSpec(memory_space=pltpu.MemorySpace.SMEM),
        ],
        out_specs=pl.BlockSpec((None, B, 128), lambda c, i: (c, 0, 0)),
        scratch_shapes=[pltpu.VMEM((4 * B, tile_p), jnp.float32)],
        compiler_params=pltpu.CompilerParams(
            dimension_semantics=("parallel", "arbitrary"),
            vmem_limit_bytes=VMEM_LIMIT),
    )(preds, pts, gt_flat)

    sums = jnp.sum(partials, axis=0)                           # [B, 128] tiny XLA epilogue
    nm = sums[:, 3]
    box_loss = _divide_no_nan(sums[:, 0], nm) * REG_WEIGHT
    class_loss = _divide_no_nan(sums[:, 1], nm) * CLASS_WEIGHT
    ctr_loss = _divide_no_nan(sums[:, 2], nm) * CENTERNESS_WEIGHT
    return box_loss, class_loss, ctr_loss


# ----------------------------------------------------------------------------
# Glue: synthetic model, static point/tiling layout, parameters
# ----------------------------------------------------------------------------
def init_params(key, c_in):
    k_stem, k_heads = jax.random.split(key)
    stem_w = (0.1 * jax.random.normal(k_stem, (C_FEAT, c_in), jnp.float32)
              ).astype(jnp.bfloat16)                           # [N, K] layout
    stem_b = jnp.zeros((C_FEAT, 1), jnp.float32)
    hkeys = jax.random.split(k_heads, len(STRIDES))
    head_w, head_b = [], []
    for lvl in range(len(STRIDES)):
        w = 0.1 * jax.random.normal(hkeys[lvl], (NUM_CLASSES + 5, C_FEAT), jnp.float32)
        w = jnp.pad(w, ((0, N_HEAD - (NUM_CLASSES + 5)), (0, 0)))
        head_w.append(w.astype(jnp.bfloat16))
        head_b.append(jnp.zeros((N_HEAD, 1), jnp.float32))
    return {"stem_w": stem_w, "stem_b": stem_b,
            "head_w": jnp.stack(head_w, axis=0),               # [L, N_HEAD, C_FEAT]
            "head_b": jnp.stack(head_b, axis=0)}               # [L, N_HEAD, 1]


def build_layout(H, W):
    """Static tiling plan + point geometry (host-side numpy, built once)."""
    hws = [(H // s) * (W // s) for s in STRIDES]
    tile_p = min(DEFAULT_TILE_P, _round_up(max(hws), 128))
    level_pad = [_round_up(hw, tile_p) for hw in hws]
    p_pad = sum(level_pad)
    n_tiles = p_pad // tile_p
    nsplit = NSPLIT if n_tiles % NSPLIT == 0 else 1

    tile_lvl = np.concatenate([np.full(level_pad[l] // tile_p, l, np.int32)
                               for l in range(len(STRIDES))])

    cols = []
    for lvl, s in enumerate(STRIDES):
        h, w = H // s, W // s
        ys = (np.arange(h, dtype=np.float32) + 0.5) * s
        xs = (np.arange(w, dtype=np.float32) + 0.5) * s
        yy, xx = np.meshgrid(ys, xs, indexing="ij")
        n, pad = h * w, level_pad[lvl]
        blk = np.zeros((4, pad), np.float32)
        blk[0, :n] = xx.reshape(-1)                            # px
        blk[1, :n] = yy.reshape(-1)                            # py
        blk[2, :n] = 1.0 / s                                   # 1/stride
        blk[3, :n] = 1.0                                       # valid flag
        cols.append(blk)
    pts = np.concatenate(cols, axis=1)                         # [4, P_pad]

    return {"plan": (hws, tile_p, level_pad, p_pad, n_tiles, nsplit),
            "tile_lvl": jnp.asarray(tile_lvl),
            "pts": jnp.asarray(pts)}


def fcos_model(images, params, layout):
    """Synthetic FCOS trunk: 1x1 stem conv + ReLU, per-stride avg pooling,
    per-level 1x1 head conv (all levels in a single Pallas launch)."""
    B, Cin, H, W = images.shape
    _, tile_p, level_pad, _, _, _ = layout["plan"]

    images_r = images.reshape(B, Cin, H * W)                   # cast happens in-kernel
    feat = stem_conv(images_r, params["stem_w"], params["stem_b"])   # [B, Cf, H*W] bf16

    s0, s1 = STRIDES
    assert s1 % s0 == 0
    ratio = s1 // s0
    h4, w4 = H // s0, W // s0
    h8, w8 = H // s1, W // s1
    feat4d = feat.reshape(B, C_FEAT, H, W).astype(jnp.float32)
    pooled4 = feat4d.reshape(B, C_FEAT, h4, s0, w4, s0).mean(axis=(3, 5))
    pooled8 = pooled4.reshape(B, C_FEAT, h8, ratio, w8, ratio).mean(axis=(3, 5))
    pooled4 = pooled4.reshape(B, C_FEAT, h4 * w4)
    pooled8 = pooled8.reshape(B, C_FEAT, h8 * w8)

    pooled_cat = jnp.concatenate([
        jnp.pad(pooled4, ((0, 0), (0, 0), (0, level_pad[0] - h4 * w4))),
        jnp.pad(pooled8, ((0, 0), (0, 0), (0, level_pad[1] - h8 * w8))),
    ], axis=-1).astype(jnp.bfloat16)                           # [B, Cf, P_pad]

    preds = head_conv(pooled_cat, params["head_w"], params["head_b"],
                      layout["tile_lvl"], tile_p)              # [B, 16, P_pad] bf16
    return preds


def fcos_forward(inputs, params, layout, mode="losses"):
    if mode != "losses":
        # TODO(synk): 'predict' mode (torch.topk + torchvision NMS) not implemented in Pallas.
        raise NotImplementedError(mode)
    images, gt_boxes, gt_labels, gt_weights = inputs
    B, Cin, H, W = images.shape
    G = gt_boxes.shape[1]
    _, tile_p, _, _, _, nsplit = layout["plan"]

    preds = fcos_model(images, params, layout)                 # [B, 16, P_pad] bf16

    # Tiny SMEM gt table: (x1, y1, x2, y2, label, weight) per box, scaled to pixels.
    gt_boxes_px = gt_boxes * jnp.array([W, H, W, H], jnp.float32)
    gt_flat = jnp.concatenate([
        gt_boxes_px,
        gt_labels.astype(jnp.float32)[..., None],
        gt_weights[..., None],
    ], axis=-1).reshape(-1)                                    # [B*G*6]

    return pallas_fcos_losses(preds, layout["pts"], gt_flat,
                              B=B, G=G, image_h=float(H), image_w=float(W),
                              tile_p=tile_p, nsplit=nsplit)


if __name__ == "__main__":
    key = jax.random.PRNGKey(0)
    k_img, k_param = jax.random.split(key)
    B, Cin, H, W = 2, 4, 16, 16
    images = jax.random.normal(k_img, (B, Cin, H, W), jnp.float32)
    gt_boxes = jnp.array([
        [[0.10, 0.10, 0.60, 0.70],
         [0.50, 0.40, 0.95, 0.95],
         [0.00, 0.00, 0.00, 0.00]],
        [[0.20, 0.20, 0.80, 0.80],
         [0.00, 0.00, 0.00, 0.00],
         [0.00, 0.00, 0.00, 0.00]],
    ], jnp.float32)                                            # normalized xyxy
    gt_labels = jnp.array([[1, 3, 0], [5, 0, 0]], jnp.int32)
    gt_weights = jnp.array([[1.0, 1.0, 0.0], [1.0, 0.0, 0.0]], jnp.float32)

    params = init_params(k_param, Cin)
    layout = build_layout(H, W)                                # static geometry + tiling plan

    out = fcos_forward((images, gt_boxes, gt_labels, gt_weights), params, layout,
                       mode="losses")
    out = jax.block_until_ready(out)
    box_loss, class_loss, ctr_loss = out
    assert box_loss.shape == (B,) and class_loss.shape == (B,) and ctr_loss.shape == (B,)
    assert all(bool(jnp.all(jnp.isfinite(x))) for x in out)
    print("KERNEL_OK")
</pallas_src>

<mosaic_0001>
module attributes {stable_mosaic.version = 11 : i64} {
  func.func @_conv1x1_kernel(%arg0: i32, %arg1: i32, %arg2: memref<1x4x256xf32, #tpu.memory_space<vmem>>, %arg3: memref<16x4xbf16, #tpu.memory_space<vmem>>, %arg4: memref<16x1xf32, #tpu.memory_space<vmem>>, %arg5: memref<1x16x256xbf16, #tpu.memory_space<vmem>>) attributes {dimension_semantics = [#tpu.dimension_semantics<parallel>, #tpu.dimension_semantics<parallel>], iteration_bounds = array<i64: 2, 1>, scalar_prefetch = 0 : i64, scratch_operands = 0 : i64, tpu.core_type = #tpu.core_type<tc>, window_params = [{transform_indices = @transform_0, window_bounds = array<i64: 1, 4, 256>}, {pipeline_mode = #tpu.pipeline_mode<synchronous>, transform_indices = @transform_1, window_bounds = array<i64: 16, 4>}, {pipeline_mode = #tpu.pipeline_mode<synchronous>, transform_indices = @transform_2, window_bounds = array<i64: 16, 1>}, {transform_indices = @transform_3, window_bounds = array<i64: 1, 16, 256>}]} {
    %c0 = arith.constant 0 : index
    %c0_0 = arith.constant 0 : index
    %c0_1 = arith.constant 0 : index
    %0 = vector.load %arg2[%c0, %c0_0, %c0_1] : memref<1x4x256xf32, #tpu.memory_space<vmem>>, vector<1x4x256xf32>
    %1 = vector.shape_cast %0 : vector<1x4x256xf32> to vector<4x256xf32>
    %2 = arith.truncf %1 : vector<4x256xf32> to vector<4x256xbf16>
    %c0_2 = arith.constant 0 : index
    %c0_3 = arith.constant 0 : index
    %3 = vector.load %arg3[%c0_2, %c0_3] : memref<16x4xbf16, #tpu.memory_space<vmem>>, vector<16x4xbf16>
    %cst = arith.constant dense<0.000000e+00> : vector<16x256xf32>
    %4 = tpu.matmul %3, %2, %cst {dimension_numbers = #tpu.dot_dimension_numbers<[1], [0], [0], [1], [0, 0, 1, 1], [], []>} : vector<16x4xbf16>, vector<4x256xbf16>, vector<16x256xf32> -> vector<16x256xf32>
    %c0_4 = arith.constant 0 : index
    %c0_5 = arith.constant 0 : index
    %5 = vector.load %arg4[%c0_4, %c0_5] : memref<16x1xf32, #tpu.memory_space<vmem>>, vector<16x1xf32>
    %6 = vector.broadcast %5 : vector<16x1xf32> to vector<16x256xf32>
    %7 = arith.addf %4, %6 : vector<16x256xf32>
    %cst_6 = arith.constant 0.000000e+00 : f32
    %8 = vector.broadcast %cst_6 : f32 to vector<16x256xf32>
    %9 = arith.maximumf %7, %8 : vector<16x256xf32>
    %10 = arith.truncf %9 : vector<16x256xf32> to vector<16x256xbf16>
    %c0_7 = arith.constant 0 : index
    %c0_8 = arith.constant 0 : index
    %c0_9 = arith.constant 0 : index
    %11 = vector.load %arg5[%c0_7, %c0_8, %c0_9] : memref<1x16x256xbf16, #tpu.memory_space<vmem>>, vector<1x16x256xbf16>
    %12 = vector.shape_cast %11 : vector<1x16x256xbf16> to vector<16x256xbf16>
    %13 = vector.shape_cast %10 : vector<16x256xbf16> to vector<1x16x256xbf16>
    tpu.vector_store %arg5[%c0_7, %c0_8, %c0_9], %13 {strides = array<i32>} : memref<1x16x256xbf16, #tpu.memory_space<vmem>>, vector<1x16x256xbf16>,
    return
  }
  func.func @transform_0(%arg0: i32, %arg1: i32) -> (i32, i32, i32) {
    %c0_i32 = arith.constant 0 : i32
    %c0_i32_0 = arith.constant 0 : i32
    return %arg0, %c0_i32, %arg1 : i32, i32, i32
  }
  func.func @transform_1(%arg0: i32, %arg1: i32) -> (i32, i32) {
    %c0_i32 = arith.constant 0 : i32
    %c0_i32_0 = arith.constant 0 : i32
    %c0_i32_1 = arith.constant 0 : i32
    return %c0_i32, %c0_i32_0 : i32, i32
  }
  func.func @transform_2(%arg0: i32, %arg1: i32) -> (i32, i32) {
    %c0_i32 = arith.constant 0 : i32
    %c0_i32_0 = arith.constant 0 : i32
    %c0_i32_1 = arith.constant 0 : i32
    return %c0_i32, %c0_i32_0 : i32, i32
  }
  func.func @transform_3(%arg0: i32, %arg1: i32) -> (i32, i32, i32) {
    %c0_i32 = arith.constant 0 : i32
    %c0_i32_0 = arith.constant 0 : i32
    return %arg0, %c0_i32, %arg1 : i32, i32, i32
  }
}

</mosaic_0001>

<bundles_post_ra>
// kernel: tpu_custom_call.1
= control target key start
LH: loop header
LB: loop body
LE: loop exit
PB: predicated region body
PF: predicated region fallthrough
CT: control target
= control target key end

     0   :  { %8 = vsyncpa [#allocation3], 0  ;;  %s663_s0 = inlined_call_operand.vmem [shape: f32[2,4,256], index: 0, kind: input, shape index: {}]   ;;  %s664_s1 = inlined_call_operand.vmem [shape: bf16[16,4], index: 1, kind: input, shape index: {}]   ;;  %s665_s2 = inlined_call_operand.vmem [shape: f32[16,1], index: 2, kind: input, shape index: {}]   ;;  %s666_s3 = inlined_call_operand.hbm [shape: bf16[2,16,256], index: 3, kind: output, shape index: {}]  }
   0x1   :  { %10 = vsyncpa [#allocation3 + $0x1], 0  ;;  %s557_s12 = smov 0   ;;  %s559_s13 = smov 0  }
   0x2   :  { %s561_s14 = smov 0   ;;  %s563_s15 = smov 0  }
   0x3   :  { %s565_s16 = smov 0   ;;  %s567_s17 = smov 0  }
   0x4 LB: > { %s373_s18 = sadd.s32 4294967295, %s532_s17   ;;  %s374_s19 = sadd.s32 4294967294, %s532_s17   ;;  %s532_s17 = sphi %s567_s17, %s16_s17   ;;  %s528_s16 = sphi %s565_s16, %s673_s16   ;;  %s524_s15 = sphi %s563_s15, %s672_s15   ;;  %s520_s14 = sphi %s561_s14, %s671_s14   ;;  %s516_s13 = sphi %s559_s13, %s670_s13   ;;  %s512_s12 = sphi %s557_s12, %s669_s12  }
   0x5   : > { %s28_s20 = sadd.s32 1, %s528_s16  ;;  %s107_s21 = sadd.s32 1, %s520_s14 }
   0x6   : > { %p30_p0 = scmp.ge.s32.totalorder %s28_s20, 2  ;;  %p117_p1 = scmp.ne.s32.totalorder %s520_s14, %s516_s13 }
   0x7   : > { %p118_p2 = scmp.eq.s32.totalorder %s373_s18, 1  ;;  %p123_p3 = scmp.ne.s32.totalorder %s516_s13, %s512_s12 }
   0x8   : > { %s675_s20 = smov (%p30_p0, %s28_s20), 0  ;;  %p124_p5 = scmp.eq.s32.totalorder %s374_s19, 1 }
   0x9   : > { %p597_p4 = por %p118_p2, %p117_p1  ;;  %s102_s23 = ssub.s32 %s528_s16, %s675_s20 }
   0xa   : > { %p377_p6 = scmp.ge.s32.totalorder %s532_s17, 1  ;;  %p105_p7 = scmp.eq.s32.totalorder %s102_s23, 0 }
   0xb   : > { %p604_p8 = por %p124_p5, %p123_p3  ;;  %p161_p9 = scmp.lt.s32.totalorder %s532_s17, 3 }
   0xc   : > { %s610_s25 = scalar_select %p105_p7, %s520_s14, %s107_s21  }
   0xd   : > { %p162_p10 = pnand %p377_p6, %p161_p9 }
   0xe   : > { %p190_p11 = scmp.lt.s32.totalorder (!%p162_p10), %s524_s15, 1  ;;  %s186_s10 = sand.u32 (!%p162_p10), 1, %s516_s13  }
   0xf   : > { %165 = sbr.rel (%p162_p10) target bundleno = 183 (0xb7), region = 32  ;;  %s378_s11 = sshll.u32 (!%p162_p10), %s186_s10, 4 }
  0x10   : > { %s394_s18 = sshll.u32 (!%p162_p10), %s524_s15, 4  ;;  %s188_s26 = scalar_lea.vmem (!%p162_p10), [#allocation2], %s378_s11 }
  0x11   : > { %s290_s23 = scalar_lea.hbm (!%p162_p10), %s666_s3, %s394_s18  ;;  %s291_s27 = sshll.u32 (!%p162_p10), %s188_s26, 4  ;;  %s292_s27 = int_to_ptr.vmem [resolvable:$true] %s291_s27 }
  0x12   : > { %s474_s6 = scalar_lea.hbm (!%p162_p10), %s666_s3, 32 }
  0x14   : > { %v212_v0 = vld [vmem:[%s665_s2] sm:$0xff]  ;;  %v534_v1 = vmov 0   ;;  %s191_s28 = scalar_select %p190_p11, %s524_s15, 1  ;;  %v213_v3 = vld [vmem:[%s665_s2 + $0x8] sm:$0xff]  ;;  %vm233_vm0 = vcmask 1041408   ;;  %vm229_vm1 = vcmask 31744  }
  0x15   : > { %453 = vset.pattern.permute.xlu0 %v534_v1  ;;  %v393_v10 = vld [vmem:[%s664_s1] sm:$0xff]  ;;  %s277_s15 = scalar_lea.sflag [#allocation3], %s186_s10 }
  0x16   : > { %216 = vperm.xlu0 %453, %v212_v0   ;;  %s392_s29 = sshll.u32 %s191_s28, 3  ;;  %s293_s28 = sshll.u32 %s290_s23, 4  ;;  %s294_s28 = int_to_ptr.hbm [resolvable:$true] %s293_s28 }
  0x17   : > { %s197_s5 = scalar_lea.vmem %s663_s0, %s392_s29  ;;  %s468_s29 = sshra.s32 %s294_s28, 4  ;;  %s469_s29 = int_to_ptr.hbm [resolvable:$true] %s468_s29 }
  0x18   : > { %v201_v2 = vld [vmem:[%s197_s5] sm:$0xff]  ;;  %s470_s30 = scalar_lea.hbm %s469_s29, 16  ;;  %p475_p1 = scmp.lt.s32.totalorder %s469_s29, %s666_s3 }
  0x19   : > { %203 = vst [vmem:[#allocation1] ss:$2 sm:$0xff] %v201_v2  ;;  %p471_p12 = scmp.ne.s32.totalorder %s469_s29, %s470_s30  ;;  %p476_p2 = scmp.lt.s32.totalorder %s474_s6, %s470_s30 }
  0x1b   : > { %p472_p13 = pnand %p471_p12, %p597_p4  ;;  %p477_p3 = por %p476_p2, %p475_p1 }
  0x1d   : > { %p473_p0 = pneg %p472_p13 }
  0x1e   : > { %221 = vperm.xlu0 %453, %v213_v3  }
  0x1f   : > { %p478_p5 = pnand %p477_p3, %p473_p0 }
  0x20   : > { %v204_v4 = vld.sshfl [vmem:[#allocation1] sm:$0xff pattern:$0x75316420]  ;;  %v205_v5 = vld.sshfl [vmem:[#allocation1 + $0x8] sm:$0xff pattern:$0x75316420] }
  0x21   : > { %v208_v6 = vpack.c.bf16 %v204_v4, %v204_v4  ;;  %v209_v7 = vpack.c.bf16 %v205_v5, %v205_v5 }
  0x23   : > { %v235_v8 = vsel %vm233_vm0, %v208_v6, 0  ;;  %v238_v9 = vsel %vm233_vm0, %v209_v7, 0 }
  0x24   : > { %247 = vmatpush.bf16.msra.mxu0 %v235_v8  ;;  %261 = vmatpush.bf16.msra.mxu1 %v238_v9 }
  0x27   : > { %385 = vmatmul.msk.bf16.vlgmr.msra.gmra.mxu0 %vm229_vm1, %v393_v10  ;;  %386 = vmatmul.msk.bf16.vlgmr.msra.gmra.mxu1 %vm229_vm1, %v393_v10 }
  0x88   : > { %v217_v11 = vpop.permute.xlu0 %216 }
  0x90   : > { %v222_v19 = vpop.permute.xlu0 %221 }
  0xa4   : > { %v249_v12 = vpop.f32.mrf.mxu0  ;;  %v263_v13 = vpop.f32.mrf.mxu1 }
  0xa5   : > { %v250_v14 = vadd.f32 %v249_v12, %v217_v11  ;;  %v264_v15 = vadd.f32 %v263_v13, %v217_v11 }
  0xa7   : > { %v268_v16 = vmax.f32 %v250_v14, 0.0  ;;  %v269_v17 = vmax.f32 %v264_v15, 0.0 }
  0xa9   : > { %v272_v18 = vpack.c.bf16 %v269_v17, %v268_v16 }
  0xab   : > { %274 = vst [vmem:[%s188_s26] sm:$0xff] %v272_v18 }
  0xac   : > { %v251_v20 = vpop.f32.mrf.mxu0  ;;  %v265_v21 = vpop.f32.mrf.mxu1 }
  0xad   : > { %v252_v22 = vadd.f32 %v251_v20, %v222_v19  ;;  %v266_v23 = vadd.f32 %v265_v21, %v222_v19 }
  0xaf   : > { %v270_v24 = vmax.f32 %v252_v22, 0.0  ;;  %v271_v25 = vmax.f32 %v266_v23, 0.0 }
  0xb1   : > { %v273_v26 = vpack.c.bf16 %v271_v25, %v270_v24 }
  0xb3   : > { %275 = vst [vmem:[%s188_s26 + $0x8] sm:$0xff] %v273_v26 }
  0xb4   : > { %481 = shalt.err (!%p478_p5)
}
  0xb5   : > { %s535_s9 = smov 128   ;;  %s536_s10 = smov 8  }
  0xb6   : > { %395 = dma.vmem_to_hbm [thread:$0]  (%p597_p4), %s292_s27, 256, %s294_s28, %s277_s15, %s535_s9, %s535_s9, %s536_s10  }
  0xb7 PF: > { %p401_p6 = scmp.ge.s32.totalorder %s532_s17, 2  ;;  %s308_s11 = sand.u32 1, %s512_s12  }
  0xb8   : > { %s309_s18 = scalar_lea.sflag [#allocation3], %s308_s11 }
  0xb9   : > { %p398_p7 = pnand %p401_p6, %p604_p8 }
  0xbb   : > { %p399_p9 = pneg %p398_p7 }
  0xbd   : > { %507 = dma.done.wait (%p399_p9), %s309_s18, 256  }
  0xbe   : > { %509 = vsyncadd (%p399_p9), %s309_s18, 4294967040  ;;  %s16_s17 = sadd.s32 1, %s532_s17   ;;  %s669_s12 = smov %s516_s13 }
  0xbf   : > { %p13_p10 = scmp.ge.s32.totalorder %s16_s17, 4   ;;  %s670_s13 = smov %s520_s14 }
  0xc0   : > { %s671_s14 = smov %s610_s25  ;;  %s672_s15 = smov %s528_s16 }
  0xc1   : > { %s673_s16 = smov %s675_s20  ;;  %15 = sbr.rel (!%p13_p10) target bundleno = 4 (0x4), region = 67 }
  0xc6   :  { %315 = vsyncpa [#allocation3], 1 }
  0xc7   :  { %317 = vsyncpa [#allocation3 + $0x1], 1 }

</bundles_post_ra>
